<compile_context>
chip_gen: v7x
topology: tpu7x:2x2x1
jax: 0.10.0
libtpu: 0.0.40
codegen_flags: <defaults>
</compile_context>

<pallas_src>
import jax
import jax.numpy as jnp
from jax.experimental import pallas as pl
from jax.experimental.pallas import tpu as pltpu


# ----------------------------------------------------------------------------
# Helpers
# ----------------------------------------------------------------------------
def _round_up(x, m):
    return ((x + m - 1) // m) * m


def _pad2_bytes(rows, cols, itemsize):
    """VMEM bytes of a 2-D tile after (sublane, lane) padding."""
    sub = max(1, 32 // itemsize)            # 8 sublanes for f32, 16 for bf16
    return _round_up(rows, sub) * _round_up(cols, 128) * itemsize


# ----------------------------------------------------------------------------
# Kernels
# ----------------------------------------------------------------------------
def _finish(h, invlen_ref, b1_ref, w2_ref, b2_ref, out_ref):
    # h: (TB, H) f32 result of the first MXU matmul (un-normalized).
    h = h * invlen_ref[...] + b1_ref[...]                 # row scale + bias (VPU)
    h = jnp.maximum(h, 0.0)                               # ReLU
    logits = jnp.dot(h, w2_ref[...],
                     preferred_element_type=jnp.float32) + b2_ref[...]
    # Numerically stable log_softmax over classes (lane axis, C=2).
    m = jnp.max(logits, axis=1, keepdims=True)
    shifted = logits - m
    lse = jnp.log(jnp.sum(jnp.exp(shifted), axis=1, keepdims=True))
    out_ref[...] = shifted - lse


def neuralnet_kernel_folded(x_ref, invlen_ref, w1_ref, b1_ref, w2_ref, b2_ref,
                            out_ref):
    # x_ref:  (TB, T*D) stream dtype (bf16 by default) -> fed straight to MXU.
    # w1_ref: (T*D, H)  stream dtype (W1 tiled T times: T-sum folded into matmul).
    h = jnp.dot(x_ref[...], w1_ref[...], preferred_element_type=jnp.float32)
    _finish(h, invlen_ref, b1_ref, w2_ref, b2_ref, out_ref)


def neuralnet_kernel_sum(x_ref, invlen_ref, w1_ref, b1_ref, w2_ref, b2_ref,
                         out_ref):
    # Fallback for very large T*D*H: x_ref (TB, T, D); upcast fused into the
    # T-reduction (no materialized f32 copy of the hot tile).
    sum_x = jnp.sum(x_ref[...], axis=1, dtype=jnp.float32)          # (TB, D)
    h = jnp.dot(sum_x, w1_ref[...], preferred_element_type=jnp.float32)
    _finish(h, invlen_ref, b1_ref, w2_ref, b2_ref, out_ref)


# ----------------------------------------------------------------------------
# Wrapper
# ----------------------------------------------------------------------------
def neuralnet_forward(ex_words, token_len, w1, b1, w2, b2, *,
                      tb=1024,
                      stream_dtype=jnp.bfloat16,
                      vmem_budget_bytes=48 * 1024 * 1024,
                      fold_limit_bytes=8 * 1024 * 1024):
    """ex_words: (B, T, D), token_len: (B,) -> (B, C) f32 log-probs.

    tb: requested rows per grid step (multiple of 8).  It is clamped to the
    batch and auto-shrunk so the double-buffered working set fits inside
    `vmem_budget_bytes` (default 48 MiB: under v7x's 64 MiB physical VMEM;
    vmem_limit_bytes is raised explicitly so v5e's 16 MiB scoped default does
    not cap the tile).
    """
    B, T, D = ex_words.shape
    H = w1.shape[1]
    C = w2.shape[1]
    itemsize = jnp.dtype(stream_dtype).itemsize

    # Fold the T-sum into the first matmul only when the tiled W1 is small.
    fold = (T * D * H * itemsize) <= fold_limit_bytes

    # Exact reciprocal (keeps tight tolerance); clamp token_len >= 1.
    inv_tok = (1.0 / jnp.maximum(token_len.astype(jnp.float32), 1.0)).reshape(B, 1)

    # --- tile sizing against the VMEM budget ---------------------------------
    tb = max(8, min(_round_up(tb, 8), _round_up(B, 8)))

    def vmem_estimate(tb_):
        if fold:
            x_tile = _pad2_bytes(tb_, T * D, itemsize)
            w1_buf = _pad2_bytes(T * D, H, itemsize)
        else:
            x_tile = tb_ * _pad2_bytes(T, D, itemsize)
            w1_buf = _pad2_bytes(D, H, 4)
        inv_tile = _pad2_bytes(tb_, 1, 4)
        out_tile = _pad2_bytes(tb_, C, 4)
        params = (w1_buf + _pad2_bytes(1, H, 4)
                  + _pad2_bytes(H, C, 4) + _pad2_bytes(1, C, 4))
        return 2 * (x_tile + inv_tile + out_tile + params)   # double-buffered

    while tb > 8 and vmem_estimate(tb) > vmem_budget_bytes - 2 * 1024 * 1024:
        tb = max(8, _round_up(tb // 2, 8))

    # --- pad batch to a multiple of the tile ---------------------------------
    Bp = _round_up(B, tb)
    pad = Bp - B
    x_stream = ex_words.astype(stream_dtype)
    if pad:
        x_stream = jnp.concatenate(
            [x_stream, jnp.zeros((pad, T, D), stream_dtype)], axis=0)
        inv_tok = jnp.concatenate(
            [inv_tok, jnp.ones((pad, 1), jnp.float32)], axis=0)

    # --- per-path inputs / specs ---------------------------------------------
    b1_2d = b1.reshape(1, H).astype(jnp.float32)
    b2_2d = b2.reshape(1, C).astype(jnp.float32)
    w2_f32 = w2.astype(jnp.float32)

    if fold:
        x_in = x_stream.reshape(Bp, T * D)                 # lane-dense hot tile
        w1_in = jnp.tile(w1.astype(jnp.float32), (T, 1)).astype(stream_dtype)
        x_spec = pl.BlockSpec((tb, T * D), lambda i: (i, 0))
        w1_spec = pl.BlockSpec((T * D, H), lambda i: (0, 0))
        kernel = neuralnet_kernel_folded
        k_dim = T * D
    else:
        x_in = x_stream
        w1_in = w1.astype(jnp.float32)
        x_spec = pl.BlockSpec((tb, T, D), lambda i: (i, 0, 0))
        w1_spec = pl.BlockSpec((D, H), lambda i: (0, 0))
        kernel = neuralnet_kernel_sum
        k_dim = D

    # Advisory cost estimate: the call is bandwidth-heavy.
    param_bytes = (w1_in.size * jnp.dtype(w1_in.dtype).itemsize
                   + (H + H * C + C) * 4)
    cost = pl.CostEstimate(
        flops=2 * Bp * k_dim * H + 2 * Bp * H * C,
        transcendentals=Bp * (C + 1),
        bytes_accessed=Bp * T * D * itemsize + Bp * 4 + Bp * C * 4 + param_bytes,
    )

    out = pl.pallas_call(
        kernel,
        out_shape=jax.ShapeDtypeStruct((Bp, C), jnp.float32),
        grid=(Bp // tb,),
        in_specs=[
            # Streamed per grid step.
            x_spec,
            pl.BlockSpec((tb, 1), lambda i: (i, 0)),
            # Weights/biases: constant block index -> DMA'd once, VMEM-resident.
            w1_spec,
            pl.BlockSpec((1, H), lambda i: (0, 0)),
            pl.BlockSpec((H, C), lambda i: (0, 0)),
            pl.BlockSpec((1, C), lambda i: (0, 0)),
        ],
        out_specs=pl.BlockSpec((tb, C), lambda i: (i, 0)),
        compiler_params=pltpu.CompilerParams(
            dimension_semantics=("parallel",),          # v7x: split across 2 TCs
            vmem_limit_bytes=int(vmem_budget_bytes),    # lift v5e 16 MiB default
        ),
        cost_estimate=cost,
    )(x_in, inv_tok, w1_in, b1_2d, w2_f32, b2_2d)

    return out[:B]


# ----------------------------------------------------------------------------
# Demo / self-test
# ----------------------------------------------------------------------------
def xavier_uniform(key, fan_in, fan_out):
    bound = jnp.sqrt(6.0 / (fan_in + fan_out))
    return jax.random.uniform(key, (fan_in, fan_out), jnp.float32, -bound, bound)


if __name__ == "__main__":
    # Small, module-consistent shapes.
    B, T, D, H, C = 32, 8, 32, 32, 2

    key = jax.random.PRNGKey(0)
    k_x, k_len, k_w1, k_b1, k_w2, k_b2 = jax.random.split(key, 6)

    ex_words = jax.random.normal(k_x, (B, T, D), dtype=jnp.float32)
    token_len = jax.random.randint(k_len, (B,), 1, T + 1).astype(jnp.float32)

    # Deterministic parameter init (mirrors xavier_uniform_ on weights,
    # PyTorch-style uniform on biases).  Weights stored (in, out).
    w1 = xavier_uniform(k_w1, D, H)
    b1 = jax.random.uniform(k_b1, (H,), jnp.float32,
                            -1.0 / jnp.sqrt(D), 1.0 / jnp.sqrt(D))
    w2 = xavier_uniform(k_w2, H, C)
    b2 = jax.random.uniform(k_b2, (C,), jnp.float32,
                            -1.0 / jnp.sqrt(H), 1.0 / jnp.sqrt(H))

    def reference(x, w1r, b1r, w2r, b2r):
        avg = jnp.sum(x, axis=1) / token_len[:, None]
        h = jnp.maximum(avg @ w1r + b1r, 0.0)
        logits = h @ w2r + b2r
        return jax.nn.log_softmax(logits, axis=1)

    # 1) Default path: bf16 streaming + folded T-sum (lane-dense hot tile).
    #    Compare against the reference evaluated on bf16-rounded x and W1.
    out_bf16 = jax.block_until_ready(
        neuralnet_forward(ex_words, token_len, w1, b1, w2, b2))
    ref_bf16 = reference(ex_words.astype(jnp.bfloat16).astype(jnp.float32),
                         w1.astype(jnp.bfloat16).astype(jnp.float32),
                         b1, w2, b2)
    assert out_bf16.shape == (B, C)
    assert jnp.allclose(out_bf16, ref_bf16, atol=2e-3, rtol=2e-3)

    # 2) f32 streaming + folded path: tight check against the pure-f32 reference.
    out_f32 = jax.block_until_ready(
        neuralnet_forward(ex_words, token_len, w1, b1, w2, b2,
                          stream_dtype=jnp.float32))
    ref_f32 = reference(ex_words, w1, b1, w2, b2)
    assert jnp.allclose(out_f32, ref_f32, atol=1e-4, rtol=1e-4)

    # 3) Fallback (sum-then-matmul) path with a multi-step grid: strict check.
    out_sum = jax.block_until_ready(
        neuralnet_forward(ex_words, token_len, w1, b1, w2, b2,
                          tb=8, stream_dtype=jnp.float32, fold_limit_bytes=0))
    assert jnp.allclose(out_sum, ref_f32, atol=1e-5, rtol=1e-5)

    print("KERNEL_OK")
</pallas_src>

<mosaic_0001>
module attributes {stable_mosaic.version = 11 : i64} {
  func.func @neuralnet_kernel_folded(%arg0: i32, %arg1: memref<32x256xbf16, #tpu.memory_space<vmem>>, %arg2: memref<32x1xf32, #tpu.memory_space<vmem>>, %arg3: memref<256x32xbf16, #tpu.memory_space<vmem>>, %arg4: memref<1x32xf32, #tpu.memory_space<vmem>>, %arg5: memref<32x2xf32, #tpu.memory_space<vmem>>, %arg6: memref<1x2xf32, #tpu.memory_space<vmem>>, %arg7: memref<32x2xf32, #tpu.memory_space<vmem>>) attributes {dimension_semantics = [#tpu.dimension_semantics<parallel>], iteration_bounds = array<i64: 1>, scalar_prefetch = 0 : i64, scratch_operands = 0 : i64, tpu.core_type = #tpu.core_type<tc>, window_params = [{transform_indices = @transform_0, window_bounds = array<i64: 32, 256>}, {transform_indices = @transform_1, window_bounds = array<i64: 32, 1>}, {pipeline_mode = #tpu.pipeline_mode<synchronous>, transform_indices = @transform_2, window_bounds = array<i64: 256, 32>}, {pipeline_mode = #tpu.pipeline_mode<synchronous>, transform_indices = @transform_3, window_bounds = array<i64: 1, 32>}, {pipeline_mode = #tpu.pipeline_mode<synchronous>, transform_indices = @transform_4, window_bounds = array<i64: 32, 2>}, {pipeline_mode = #tpu.pipeline_mode<synchronous>, transform_indices = @transform_5, window_bounds = array<i64: 1, 2>}, {transform_indices = @transform_6, window_bounds = array<i64: 32, 2>}]} {
    %c0 = arith.constant 0 : index
    %c0_0 = arith.constant 0 : index
    %0 = vector.load %arg1[%c0, %c0_0] : memref<32x256xbf16, #tpu.memory_space<vmem>>, vector<32x256xbf16>
    %c0_1 = arith.constant 0 : index
    %c0_2 = arith.constant 0 : index
    %1 = vector.load %arg3[%c0_1, %c0_2] : memref<256x32xbf16, #tpu.memory_space<vmem>>, vector<256x32xbf16>
    %cst = arith.constant dense<0.000000e+00> : vector<32x32xf32>
    %2 = tpu.matmul %0, %1, %cst {dimension_numbers = #tpu.dot_dimension_numbers<[1], [0], [0], [1], [0, 0, 1, 1], [], []>} : vector<32x256xbf16>, vector<256x32xbf16>, vector<32x32xf32> -> vector<32x32xf32>
    %c0_3 = arith.constant 0 : index
    %c0_4 = arith.constant 0 : index
    %3 = vector.load %arg2[%c0_3, %c0_4] : memref<32x1xf32, #tpu.memory_space<vmem>>, vector<32x1xf32>
    %4 = vector.broadcast %3 : vector<32x1xf32> to vector<32x32xf32>
    %5 = arith.mulf %2, %4 : vector<32x32xf32>
    %c0_5 = arith.constant 0 : index
    %c0_6 = arith.constant 0 : index
    %6 = vector.load %arg4[%c0_5, %c0_6] : memref<1x32xf32, #tpu.memory_space<vmem>>, vector<1x32xf32>
    %7 = vector.broadcast %6 : vector<1x32xf32> to vector<32x32xf32>
    %8 = arith.addf %5, %7 : vector<32x32xf32>
    %cst_7 = arith.constant 0.000000e+00 : f32
    %9 = vector.broadcast %cst_7 : f32 to vector<32x32xf32>
    %10 = arith.maximumf %8, %9 : vector<32x32xf32>
    %c0_8 = arith.constant 0 : index
    %c0_9 = arith.constant 0 : index
    %11 = vector.load %arg5[%c0_8, %c0_9] : memref<32x2xf32, #tpu.memory_space<vmem>>, vector<32x2xf32>
    %cst_10 = arith.constant dense<0.000000e+00> : vector<32x2xf32>
    %12 = tpu.matmul %10, %11, %cst_10 {dimension_numbers = #tpu.dot_dimension_numbers<[1], [0], [0], [1], [0, 0, 1, 1], [], []>} : vector<32x32xf32>, vector<32x2xf32>, vector<32x2xf32> -> vector<32x2xf32>
    %c0_11 = arith.constant 0 : index
    %c0_12 = arith.constant 0 : index
    %13 = vector.load %arg6[%c0_11, %c0_12] : memref<1x2xf32, #tpu.memory_space<vmem>>, vector<1x2xf32>
    %14 = vector.broadcast %13 : vector<1x2xf32> to vector<32x2xf32>
    %15 = arith.addf %12, %14 : vector<32x2xf32>
    %cst_13 = arith.constant dense<0xFF800000> : vector<32xf32>
    %16 = vector.multi_reduction <maximumf>, %15, %cst_13 [1] : vector<32x2xf32> to vector<32xf32>
    %17 = vector.shape_cast %16 : vector<32xf32> to vector<32x1xf32>
    %18 = vector.broadcast %17 : vector<32x1xf32> to vector<32x2xf32>
    %19 = arith.subf %15, %18 : vector<32x2xf32>
    %20 = math.exp %19 : vector<32x2xf32>
    %cst_14 = arith.constant dense<0.000000e+00> : vector<32xf32>
    %21 = vector.multi_reduction <add>, %20, %cst_14 [1] : vector<32x2xf32> to vector<32xf32>
    %22 = vector.shape_cast %21 : vector<32xf32> to vector<32x1xf32>
    %23 = math.log %22 : vector<32x1xf32>
    %24 = vector.broadcast %23 : vector<32x1xf32> to vector<32x2xf32>
    %25 = arith.subf %19, %24 : vector<32x2xf32>
    %c0_15 = arith.constant 0 : index
    %c0_16 = arith.constant 0 : index
    %26 = vector.load %arg7[%c0_15, %c0_16] : memref<32x2xf32, #tpu.memory_space<vmem>>, vector<32x2xf32>
    tpu.vector_store %arg7[%c0_15, %c0_16], %25 {strides = array<i32>} : memref<32x2xf32, #tpu.memory_space<vmem>>, vector<32x2xf32>,
    return
  }
  func.func @transform_0(%arg0: i32) -> (i32, i32) {
    %c0_i32 = arith.constant 0 : i32
    %c0_i32_0 = arith.constant 0 : i32
    return %arg0, %c0_i32 : i32, i32
  }
  func.func @transform_1(%arg0: i32) -> (i32, i32) {
    %c0_i32 = arith.constant 0 : i32
    %c0_i32_0 = arith.constant 0 : i32
    return %arg0, %c0_i32 : i32, i32
  }
  func.func @transform_2(%arg0: i32) -> (i32, i32) {
    %c0_i32 = arith.constant 0 : i32
    %c0_i32_0 = arith.constant 0 : i32
    %c0_i32_1 = arith.constant 0 : i32
    return %c0_i32, %c0_i32_0 : i32, i32
  }
  func.func @transform_3(%arg0: i32) -> (i32, i32) {
    %c0_i32 = arith.constant 0 : i32
    %c0_i32_0 = arith.constant 0 : i32
    %c0_i32_1 = arith.constant 0 : i32
    return %c0_i32, %c0_i32_0 : i32, i32
  }
  func.func @transform_4(%arg0: i32) -> (i32, i32) {
    %c0_i32 = arith.constant 0 : i32
    %c0_i32_0 = arith.constant 0 : i32
    %c0_i32_1 = arith.constant 0 : i32
    return %c0_i32, %c0_i32_0 : i32, i32
  }
  func.func @transform_5(%arg0: i32) -> (i32, i32) {
    %c0_i32 = arith.constant 0 : i32
    %c0_i32_0 = arith.constant 0 : i32
    %c0_i32_1 = arith.constant 0 : i32
    return %c0_i32, %c0_i32_0 : i32, i32
  }
  func.func @transform_6(%arg0: i32) -> (i32, i32) {
    %c0_i32 = arith.constant 0 : i32
    %c0_i32_0 = arith.constant 0 : i32
    return %arg0, %c0_i32 : i32, i32
  }
}

</mosaic_0001>

<bundles_post_ra>
// kernel: tpu_custom_call.1
= control target key start
LH: loop header
LB: loop body
LE: loop exit
PB: predicated region body
PF: predicated region fallthrough
CT: control target
= control target key end

     0   :  { %v559_v1 = vmov 0   ;;  %vm279_vm0 = vcmask 261120   ;;  %vm377_vm1 = vcmask 15360   ;;  %s713_s2 = inlined_call_operand.vmem [shape: bf16[256,32], index: 2, kind: input, shape index: {}]   ;;  %s714_s0 = inlined_call_operand.vmem [shape: bf16[32,256], index: 0, kind: input, shape index: {}]   ;;  %s715_s1 = inlined_call_operand.vmem [shape: f32[32,1], index: 1, kind: input, shape index: {}]   ;;  %s716_s4 = inlined_call_operand.vmem [shape: f32[32,2], index: 4, kind: input, shape index: {}]   ;;  %s717_s3 = inlined_call_operand.vmem [shape: f32[1,32], index: 3, kind: input, shape index: {}]   ;;  %s718_s5 = inlined_call_operand.vmem [shape: f32[1,2], index: 5, kind: input, shape index: {}]   ;;  %s719_s6 = inlined_call_operand.vmem [shape: f32[32,2], index: 6, kind: output, shape index: {}]  }
   0x1   :  { %v521_v0 = vld [vmem:[%s713_s2 + $0x40] sm:$0xff]   ;;  %519 = vset.pattern.permute.xlu0 %v559_v1  ;;  %520 = vset.pattern.permute.xlu1 %v559_v1  ;;  %v523_v3 = vld [vmem:[%s713_s2 + $0x48] sm:$0xff]   ;;  %v525_v5 = vld [vmem:[%s713_s2 + $0x50] sm:$0xff]  }
   0x2   :  { %v522_v2 = vld [vmem:[%s713_s2] sm:$0xff]   ;;  %460 = vmatprep.subr.bf16.mxu0 %v521_v0  ;;  %v524_v4 = vld [vmem:[%s713_s2 + $0x8] sm:$0xff]   ;;  %v526_v6 = vld [vmem:[%s713_s2 + $0x10] sm:$0xff]  }
   0x3   :  { %461 = vmatpush3.bf16.msra.mxu0 %v522_v2  ;;  %v527_v7 = vld [vmem:[%s713_s2 + $0x58] sm:$0xff]   ;;  %v529_v9 = vld [vmem:[%s713_s2 + $0x60] sm:$0xff]   ;;  %v531_v11 = vld [vmem:[%s713_s2 + $0x68] sm:$0xff]  }
   0x4   :  { %462 = vmatprep.subr.bf16.mxu0 %v523_v3  ;;  %v528_v8 = vld [vmem:[%s713_s2 + $0x18] sm:$0xff]   ;;  %v530_v10 = vld [vmem:[%s713_s2 + $0x20] sm:$0xff]   ;;  %v532_v14 = vld [vmem:[%s713_s2 + $0x28] sm:$0xff]  }
   0x5   :  { %v539_v12 = vld [vmem:[%s714_s0 + $0x4] ss:$8 sps:$4 sm:$0xff]   ;;  %v227_v15 = vld [vmem:[%s715_s1 + $0x10] sm:$0xff]  ;;  %v228_v18 = vld [vmem:[%s715_s1 + $0x18] sm:$0xff] }
   0x6   :  { %v225_v13 = vld [vmem:[%s715_s1] sm:$0xff]  ;;  %208 = vmatprep.mubr.bf16.mxu0 %v539_v12  ;;  %v533_v16 = vld [vmem:[%s713_s2 + $0x70] sm:$0xff]   ;;  %241 = vperm.xlu1 %520, %v227_v15   ;;  %v226_v17 = vld [vmem:[%s715_s1 + $0x8] sm:$0xff] }
   0x7   :  { %463 = vmatpush3.bf16.msra.mxu0 %v524_v4  ;;  %231 = vperm.xlu0 %519, %v225_v13   ;;  %v534_v19 = vld [vmem:[%s713_s2 + $0x30] sm:$0xff]   ;;  %v535_v20 = vld [vmem:[%s713_s2 + $0x78] sm:$0xff]   ;;  %v537_v22 = vld [vmem:[%s714_s0] ss:$8 sps:$4 sm:$0xff]  }
   0x8   :  { %464 = vmatprep.subr.bf16.mxu0 %v525_v5  ;;  %v536_v21 = vld [vmem:[%s713_s2 + $0x38] sm:$0xff]   ;;  %v268_v25 = vld [vmem:[%s716_s4] sm:$0xff]  ;;  %v269_v26 = vld [vmem:[%s716_s4 + $0x8] sm:$0xff] }
   0x9   :  { %v540_v23 = vld [vmem:[%s714_s0 + $0x14] ss:$8 sps:$4 sm:$0xff]   ;;  %v542_v24 = vld [vmem:[%s714_s0 + $0x10] ss:$8 sps:$4 sm:$0xff]   ;;  %v510_v27 = vpack.c.bf16 %v269_v26, %v268_v25  ;;  %v454_v37 = vld [vmem:[%s717_s3] ss:$0 sm:$0xff] }
   0xa   :  { %246 = vperm.xlu1 %520, %v228_v18   ;;  %v270_v28 = vld [vmem:[%s716_s4 + $0x10] sm:$0xff]  ;;  %v271_v29 = vld [vmem:[%s716_s4 + $0x18] sm:$0xff]  ;;  %v455_v60 = vld [vmem:[%s718_s5] ss:$0 sm:$0xff] }
   0xb   :  { %465 = vmatpush3.bf16.msra.mxu0 %v526_v6  ;;  %236 = vperm.xlu0 %519, %v226_v17   ;;  %v514_v30 = vpack.c.bf16 %v271_v29, %v270_v28 }
   0xc   :  { %466 = vmatprep.subr.bf16.mxu0 %v527_v7  ;;  %511 = vmatprep.subr.bf16.mxu1 %v510_v27 }
   0xd   :  { %513 = vmatpush3.bf16.msra.mxu1 %v510_v27 }
   0xe   :  { %515 = vmatprep.subr.bf16.mxu1 %v514_v30 }
   0xf   :  { %467 = vmatpush3.bf16.msra.mxu0 %v528_v8 }
  0x10   :  { %468 = vmatprep.subr.bf16.mxu0 %v529_v9 }
  0x11   :  { %517 = vmatpush3.bf16.msra.mxu1 %v514_v30 }
  0x13   :  { %469 = vmatpush3.bf16.msra.mxu0 %v530_v10 }
  0x14   :  { %470 = vmatprep.subr.bf16.mxu0 %v531_v11 }
  0x17   :  { %471 = vmatpush3.bf16.msra.mxu0 %v532_v14 }
  0x18   :  { %472 = vmatprep.subr.bf16.mxu0 %v533_v16 }
  0x1b   :  { %473 = vmatpush3.bf16.msra.mxu0 %v534_v19 }
  0x1c   :  { %474 = vmatprep.subr.bf16.mxu0 %v535_v20 }
  0x1f   :  { %475 = vmatpush3.bf16.msra.mxu0 %v536_v21 }
  0x22   :  { %209 = vmatmul.mubr.bf16.vlgmr.msra.gmra.mrb[0].mxu0 %v537_v22 }
  0x23   :  { %216 = vmatprep.mubr.bf16.mxu0 %v540_v23 }
  0x2a   :  { %217 = vmatmul.mubr.bf16.gmra.mrb[4].mxu0 %v542_v24 }
  0x85   :  { %v242_v43 = vpop.permute.xlu1 %241 }
  0x86   :  { %v232_v31 = vpop.permute.xlu0 %231 }
  0x89   :  { %v247_v54 = vpop.permute.xlu1 %246 }
  0x8a   :  { %v237_v38 = vpop.permute.xlu0 %236 }
  0xf5   :  { %v476_v32 = vpop.f32.mrb[0].mxu0 }
  0xf6   :  { %v477_v33 = vpop.f32.mrb[1].mxu0 }
  0xf7   :  { %v478_v34 = vadd.f32 %v477_v33, %v476_v32  ;;  %v479_v35 = vpop.f32.mrb[2].mxu0 }
  0xf8   :  { %v480_v36 = vpop.f32.mrb[3].mxu0 }
  0xf9   :  { %v249_v39 = vmul.f32 %v478_v34, %v232_v31  ;;  %v481_v40 = vadd.f32 %v480_v36, %v479_v35 }
  0xfb   :  { %v250_v41 = vmul.f32 %v481_v40, %v237_v38  ;;  %v260_v42 = vadd.f32 %v454_v37, %v249_v39 }
  0xfd   :  { %v261_v44 = vadd.f32 %v454_v37, %v250_v41  ;;  %v482_v45 = vpop.f32.mrb[4].mxu0  ;;  %v264_v46 = vmax.f32 %v260_v42, 0.0 }
  0xfe   :  { %v483_v47 = vpop.f32.mrb[5].mxu0 }
  0xff   :  { %v265_v48 = vmax.f32 %v261_v44, 0.0  ;;  %v484_v49 = vadd.f32 %v483_v47, %v482_v45  ;;  %v485_v50 = vpop.f32.mrb[6].mxu0  ;;  %504 = vmatprep.mubr.msk.f32.mxu1 %vm279_vm0, %v264_v46 }
 0x100   :  { %v486_v51 = vpop.f32.mrb[7].mxu0 }
 0x101   :  { %v251_v52 = vmul.f32 %v484_v49, %v242_v43  ;;  %v487_v53 = vadd.f32 %v486_v51, %v485_v50  ;;  %505 = vmatmul.mubr.msk.f32.vlgmr.msra.gmra.mrb[0].mxu1 %vm279_vm0, %v265_v48 }
 0x103   :  { %v262_v55 = vadd.f32 %v454_v37, %v251_v52  ;;  %v252_v56 = vmul.f32 %v487_v53, %v247_v54 }
 0x105   :  { %v266_v57 = vmax.f32 %v262_v55, 0.0  ;;  %v263_v58 = vadd.f32 %v454_v37, %v252_v56 }
 0x107   :  { %v267_v59 = vmax.f32 %v263_v58, 0.0  ;;  %507 = vmatprep.mubr.msk.f32.mxu1 %vm279_vm0, %v266_v57 }
 0x109   :  { %508 = vmatmul.mubr.msk.f32.gmra.mrb[2].mxu1 %vm279_vm0, %v267_v59 }
 0x1d4   :  { %v506_v61 = vpop.f32.mrb[0].mxu1 }
 0x1d5   :  { %v364_v62 = vadd.f32 %v506_v61, %v455_v60  ;;  %v358_v63 = vpop.f32.mrb[1].mxu1 }
 0x1d6   :  { %v359_v0 = vadd.f32 %v455_v60, %v358_v63 }
 0x1d7   :  { %v381_v1 = vsel %vm377_vm1, %v364_v62, -inf }
 0x1d8   :  { %382 = vmax.xlane.f32.xlu1 %v381_v1  ;;  %v378_v2 = vsel %vm377_vm1, %v359_v0, -inf }
 0x1d9   :  { %379 = vmax.xlane.f32.xlu0 %v378_v2 }
 0x1dc   :  { %v509_v3 = vpop.f32.mrb[2].mxu1 }
 0x1dd   :  { %v368_v4 = vpop.f32.mrb[3].mxu1  ;;  %v374_v6 = vadd.f32 %v509_v3, %v455_v60 }
 0x1de   :  { %v369_v5 = vadd.f32 %v455_v60, %v368_v4 }
 0x1df   :  { %v387_v8 = vsel %vm377_vm1, %v374_v6, -inf }
 0x1e0   :  { %v384_v7 = vsel %vm377_vm1, %v369_v5, -inf }
 0x1e1   :  { %385 = vmax.xlane.f32.xlu0 %v384_v7 }
 0x1e5   :  { %388 = vmax.xlane.f32.xlu0 %v387_v8 }
 0x265   :  { %v383_v9 = vpop.xlane.xlu1 %382 }
 0x266   :  { %v391_v10 = vsub.f32 %v364_v62, %v383_v9  ;;  %v380_v11 = vpop.xlane.xlu0 %379 }
 0x267   :  { %v390_v12 = vsub.f32 %v359_v0, %v380_v11 }
 0x268   :  { %v396_v13 = vmul.f32 1.442695, %v391_v10 }
 0x269   :  { %v394_v14 = vmul.f32 1.442695, %v390_v12 }
 0x26a   :  { %543 = vpow2.f32 %v396_v13 }
 0x26b   :  { %545 = vpow2.f32 %v394_v14 }
 0x26e   :  { %v386_v15 = vpop.xlane.xlu0 %385 }
 0x26f   :  { %v392_v16 = vsub.f32 %v369_v5, %v386_v15 }
 0x271   :  { %v398_v17 = vmul.f32 1.442695, %v392_v16 }
 0x272   :  { %v389_v18 = vpop.xlane.xlu0 %388 }
 0x273   :  { %547 = vpow2.f32 %v398_v17  ;;  %v393_v19 = vsub.f32 %v374_v6, %v389_v18 }
 0x274   :  { %v544_v20 = vpop.eup %543 }
 0x275   :  { %v546_v21 = vpop.eup %545  ;;  %v400_v22 = vmul.f32 1.442695, %v393_v19  ;;  %v405_v23 = vsel %vm377_vm1, %v544_v20, 0.0 }
 0x276   :  { %406 = vadd.xlane.f32.xlu0 %v405_v23  ;;  %v402_v24 = vsel %vm377_vm1, %v546_v21, 0.0 }
 0x277   :  { %549 = vpow2.f32 %v400_v22  ;;  %403 = vadd.xlane.f32.xlu1 %v402_v24 }
 0x27d   :  { %v548_v25 = vpop.eup %547 }
 0x27e   :  { %v408_v26 = vsel %vm377_vm1, %v548_v25, 0.0 }
 0x27f   :  { %409 = vadd.xlane.f32.xlu1 %v408_v26 }
 0x281   :  { %v550_v27 = vpop.eup %549 }
 0x282   :  { %v411_v28 = vsel %vm377_vm1, %v550_v27, 0.0 }
 0x283   :  { %412 = vadd.xlane.f32.xlu0 %v411_v28 }
 0x303   :  { %v407_v29 = vpop.xlane.xlu0 %406 }
 0x304   :  { %551 = vlog2.f32 %v407_v29  ;;  %v404_v30 = vpop.xlane.xlu1 %403 }
 0x305   :  { %553 = vlog2.f32 %v404_v30 }
 0x30c   :  { %v410_v31 = vpop.xlane.xlu1 %409 }
 0x30d   :  { %555 = vlog2.f32 %v410_v31 }
 0x30e   :  { %v552_v32 = vpop.eup %551 }
 0x30f   :  { %v554_v33 = vpop.eup %553  ;;  %v417_v34 = vmul.f32 0.6931472, %v552_v32 }
 0x310   :  { %v415_v35 = vmul.f32 0.6931472, %v554_v33  ;;  %v413_v36 = vpop.xlane.xlu0 %412 }
 0x311   :  { %v423_v37 = vsub.f32 %v391_v10, %v417_v34  ;;  %557 = vlog2.f32 %v413_v36 }
 0x312   :  { %v422_v38 = vsub.f32 %v390_v12, %v415_v35 }
 0x313   :  { %427 = vst.msk [vmem:[%s719_s6 + $0x8] sm:$0xff] %vm377_vm1, %v423_v37 }
 0x314   :  { %426 = vst.msk [vmem:[%s719_s6] sm:$0xff] %vm377_vm1, %v422_v38 }
 0x317   :  { %v556_v39 = vpop.eup %555 }
 0x318   :  { %v419_v40 = vmul.f32 0.6931472, %v556_v39 }
 0x31a   :  { %v424_v41 = vsub.f32 %v392_v16, %v419_v40 }
 0x31b   :  { %v558_v42 = vpop.eup %557 }
 0x31c   :  { %428 = vst.msk [vmem:[%s719_s6 + $0x10] sm:$0xff] %vm377_vm1, %v424_v41  ;;  %v421_v43 = vmul.f32 0.6931472, %v558_v42 }
 0x31e   :  { %v425_v44 = vsub.f32 %v393_v19, %v421_v43 }
 0x320   :  { %429 = vst.msk [vmem:[%s719_s6 + $0x18] sm:$0xff] %vm377_vm1, %v425_v44 }

</bundles_post_ra>
